<compile_context>
chip_gen: v5e
topology: v5e:2x2
jax: 0.10.0
libtpu: 0.0.40
codegen_flags: <defaults>
</compile_context>

<pallas_src>
import functools
import math

import jax
import jax.numpy as jnp
from jax.experimental import pallas as pl
from jax.experimental.pallas import tpu as pltpu

EPS = 1e-5            # nn.InstanceNorm1d default eps (affine=False, biased var)
_MIN_GRID_STEPS = 8   # >= ~4x TensorCore count (v7x has 2 TCs)

# Placeholder "signal processing" modules (constructor args of the PyTorch
# module).  Only elementwise transforms from this registry run in the kernel.
# TODO(synk): arbitrary torch nn.Module signal-processing modules cannot be
# auto-translated; extend this registry with the real elementwise transforms.
_TRANSFORMS = {
    "abs": jnp.abs,
    "square": lambda v: v * v,
    "identity": lambda v: v,
    "relu": lambda v: jnp.maximum(v, 0.0),
    "sin": jnp.sin,
}


def _round_up(x, m):
    return -(-x // m) * m


def _signal_layer_kernel(x_ref, w_ref, b_ref, mid_ref, o_ref, *,
                         cout, split, modules, true_len, padded):
    # x_ref  : (Bt, Cin, Lp)   'b c l' layout, L lane-dense
    # w_ref  : (2*Cout, Cin)   rows [0,Cout) = softmax-sparse weight,
    #                          rows [Cout,2*Cout) = sparse skip weight
    # b_ref  : (2*Cout, 1)     fused biases (f32)
    # mid_ref: (Cout, 1) int32 module id per output channel (fallback path only)
    # o_ref  : (Bt, Cout, Lp)
    bt = x_ref.shape[0]

    # --- InstanceNorm1d over L, vectorized over the whole tile -------------
    x = x_ref[...].astype(jnp.float32)                       # (Bt, Cin, Lp)
    inv_len = 1.0 / float(true_len)
    mean = jnp.sum(x, axis=-1, keepdims=True) * inv_len      # (Bt, Cin, 1)
    if padded:
        # Zero-padded lanes: E[x^2] - mean^2 so pads don't corrupt the stats.
        var = jnp.sum(x * x, axis=-1, keepdims=True) * inv_len - mean * mean
        normed = (x - mean) * jax.lax.rsqrt(var + EPS)
    else:
        ctr = x - mean
        var = jnp.sum(ctr * ctr, axis=-1, keepdims=True) * inv_len
        normed = ctr * jax.lax.rsqrt(var + EPS)               # (Bt, Cin, Lp)

    # --- fused main + skip linear: one batched MXU pass for the tile -------
    w = w_ref[...]                                            # (2C, Cin)
    wb = jnp.broadcast_to(w[None], (bt,) + w.shape)           # (Bt, 2C, Cin)
    y = jax.lax.dot_general(
        wb, normed.astype(w.dtype),
        dimension_numbers=(((2,), (1,)), ((0,), (0,))),
        preferred_element_type=jnp.float32)                   # (Bt, 2C, Lp)
    y = y + b_ref[...]                                        # bias broadcast

    y_main = y[:, :cout, :]                                   # (Bt, Cout, Lp)
    y_skip = y[:, cout:, :]                                   # (Bt, Cout, Lp)

    # --- per-module transform + skip add ------------------------------------
    if split % 8 == 0:
        # Sublane-aligned static channel slices: each transform only touches
        # its own rows, stored directly (no selects, no wasted transforms).
        for i, name in enumerate(modules):
            rows = slice(i * split, (i + 1) * split)
            o_ref[:, rows, :] = (_TRANSFORMS[name](y_main[:, rows, :])
                                 + y_skip[:, rows, :]).astype(o_ref.dtype)
    else:
        # Fallback for non-8-aligned splits: select chain, masks hoisted once
        # per tile (no per-example loop left to re-emit them in).
        mid = mid_ref[...]                                    # (Cout, 1)
        proc = y_main
        for i, name in enumerate(modules):
            proc = jnp.where(mid == i, _TRANSFORMS[name](y_main), proc)
        o_ref[...] = (proc + y_skip).astype(o_ref.dtype)


def _vmem_limit_bytes():
    try:
        cap = int(pltpu.get_tpu_info().vmem_capacity_bytes)
    except Exception:
        cap = 64 << 20            # conservative: v7x has 64 MiB per TensorCore
    return min(cap * 3 // 4, 96 << 20)


def _pick_batch_tile(B, cin, cout, lp, x_bytes, out_bytes, op_bytes, vmem_limit):
    """Largest batch tile that fits VMEM, floored to >= _MIN_GRID_STEPS steps."""
    per_b = (2 * cin * lp * x_bytes                 # double-buffered input block
             + 2 * cout * lp * out_bytes            # double-buffered output block
             + 3 * cin * lp * 4                     # f32 x, centered, normed
             + cin * lp * op_bytes                  # matmul-operand copy of normed
             + _round_up(2 * cout, 8) * 128 * op_bytes  # broadcast weights (lane-padded)
             + 3 * 2 * cout * lp * 4)               # y + transform/staging (f32)
    budget = int(vmem_limit * 0.8)                  # ~20% headroom for scratch
    bt_vmem = max(1, budget // max(per_b, 1))
    bt_steps = pl.cdiv(B, _MIN_GRID_STEPS)          # keep >= _MIN_GRID_STEPS steps
    return int(max(1, min(bt_vmem, bt_steps, B, 2048)))


def signal_processing_layer(x, w_main, b_main, mask_main, w_skip, b_skip,
                            mask_skip, *, temperature=0.1,
                            signal_modules=("abs", "square"),
                            matmul_dtype=None):
    """x: (B, L, Cin).  w_*: (Cout, Cin).  b_*: (Cout,).  mask_*: (Cout, Cin)."""
    assert x.ndim == 3
    B, L, Cin = x.shape
    Cout = w_main.shape[0]
    n_mod = len(signal_modules)
    # torch.split semantics require equal chunks for the zip with modules.
    assert n_mod >= 1 and Cout % n_mod == 0, \
        "output channels must split evenly across modules"
    split = Cout // n_mod

    if matmul_dtype is None:  # bf16 MXU feed only when inputs are already bf16
        matmul_dtype = jnp.bfloat16 if x.dtype == jnp.bfloat16 else jnp.float32
    op_dtype = jnp.dtype(matmul_dtype)

    # --- parameter preprocessing (tiny, data independent; plain XLA) --------
    w_soft = jax.nn.softmax(w_main.astype(jnp.float32) / temperature, axis=0) * mask_main
    w_sk = w_skip.astype(jnp.float32) * mask_skip
    w_fused = jnp.concatenate([w_soft, w_sk], axis=0).astype(op_dtype)  # (2C, Cin)
    b_fused = jnp.concatenate([b_main, b_skip]).astype(jnp.float32).reshape(2 * Cout, 1)
    module_id = (jnp.arange(Cout, dtype=jnp.int32) // split).reshape(Cout, 1)

    # --- lane-dense 'b c l' layout (wrapper-side plumbing; callers that
    #     already hold 'b c l' data can skip both transposes) ---------------
    x_t = jnp.transpose(x, (0, 2, 1))                                   # (B, Cin, L)

    # --- pad L to a lane multiple (unmasked vst); stats use the true L -----
    Lp = _round_up(L, 128)

    # --- batch tile: VMEM-sized (incl. f32 intermediates), grid-step floor --
    vmem_limit = _vmem_limit_bytes()
    Bt = _pick_batch_tile(B, Cin, Cout, Lp, x.dtype.itemsize,
                          x.dtype.itemsize, op_dtype.itemsize, vmem_limit)
    n_tiles = pl.cdiv(B, Bt)
    B_pad = n_tiles * Bt
    if B_pad != B or Lp != L:
        x_t = jnp.pad(x_t, ((0, B_pad - B), (0, 0), (0, Lp - L)))

    kernel = functools.partial(
        _signal_layer_kernel, cout=Cout, split=split,
        modules=tuple(signal_modules), true_len=L, padded=(Lp != L))

    out_t = pl.pallas_call(
        kernel,
        out_shape=jax.ShapeDtypeStruct((B_pad, Cout, Lp), x.dtype),
        grid=(n_tiles,),
        in_specs=[
            pl.BlockSpec((Bt, Cin, Lp), lambda i: (i, 0, 0)),
            pl.BlockSpec((2 * Cout, Cin), lambda i: (0, 0)),
            pl.BlockSpec((2 * Cout, 1), lambda i: (0, 0)),
            pl.BlockSpec((Cout, 1), lambda i: (0, 0)),
        ],
        out_specs=pl.BlockSpec((Bt, Cout, Lp), lambda i: (i, 0, 0)),
        compiler_params=pltpu.CompilerParams(
            dimension_semantics=("parallel",),       # independent batch tiles
            vmem_limit_bytes=vmem_limit),
    )(x_t, w_fused, b_fused, module_id)

    out = out_t[:B, :, :L]                                              # (B, Cout, L)
    return jnp.transpose(out, (0, 2, 1))                                # (B, L, Cout)


def _reference(x, w_main, b_main, mask_main, w_skip, b_skip, mask_skip,
               *, temperature=0.1, signal_modules=("abs", "square")):
    # Pure-JAX reference mirroring the PyTorch forward (b l c layout).
    x = x.astype(jnp.float32)
    mean = jnp.mean(x, axis=1, keepdims=True)
    var = jnp.mean((x - mean) ** 2, axis=1, keepdims=True)
    normed = (x - mean) / jnp.sqrt(var + EPS)
    w = jax.nn.softmax(w_main / temperature, axis=0) * mask_main
    y = normed @ w.T + b_main
    split = y.shape[-1] // len(signal_modules)
    parts = [_TRANSFORMS[m](y[..., i * split:(i + 1) * split])
             for i, m in enumerate(signal_modules)]
    proc = jnp.concatenate(parts, axis=-1)
    skip = normed @ (w_skip * mask_skip).T + b_skip
    return proc + skip


def _init_sparse_linear(key, in_features, out_features, sparsity=0.9):
    kw, kb, km = jax.random.split(key, 3)
    bound = 1.0 / math.sqrt(in_features)  # kaiming_uniform(a=sqrt(5)) == U(-1/sqrt(fan_in), .)
    w = jax.random.uniform(kw, (out_features, in_features), jnp.float32, -bound, bound)
    b = jax.random.uniform(kb, (out_features,), jnp.float32, -bound, bound)
    rnd = jax.random.uniform(km, (out_features, in_features), jnp.float32)
    thr = jnp.quantile(rnd, sparsity)
    mask = (rnd > thr).astype(jnp.float32)
    return w, b, mask


if __name__ == "__main__":
    key = jax.random.PRNGKey(0)
    temperature = 0.1

    # --- Run 1: aligned split (split % 8 == 0), L multiple of 128, f32 -----
    B, L, Cin, Cout = 4, 128, 8, 16
    modules = ("abs", "square")
    kx, k1, k2, key = jax.random.split(key, 4)
    x = jax.random.normal(kx, (B, L, Cin), jnp.float32)
    w_m, b_m, m_m = _init_sparse_linear(k1, Cin, Cout)
    w_s, b_s, m_s = _init_sparse_linear(k2, Cin, Cout)

    out = jax.block_until_ready(signal_processing_layer(
        x, w_m, b_m, m_m, w_s, b_s, m_s,
        temperature=temperature, signal_modules=modules))
    ref = _reference(x, w_m, b_m, m_m, w_s, b_s, m_s,
                     temperature=temperature, signal_modules=modules)
    assert out.shape == (B, L, Cout)
    assert jnp.allclose(out, ref, atol=1e-3, rtol=1e-3), "run1 mismatch vs reference"

    # --- Run 2: non-aligned split (where path), L padded, batch not tiled ---
    B2, L2, Cin2, Cout2 = 5, 96, 8, 8
    kx2, k3, k4, key = jax.random.split(key, 4)
    x2 = jax.random.normal(kx2, (B2, L2, Cin2), jnp.float32)
    w_m2, b_m2, m_m2 = _init_sparse_linear(k3, Cin2, Cout2)
    w_s2, b_s2, m_s2 = _init_sparse_linear(k4, Cin2, Cout2)

    out2 = jax.block_until_ready(signal_processing_layer(
        x2, w_m2, b_m2, m_m2, w_s2, b_s2, m_s2,
        temperature=temperature, signal_modules=modules))
    ref2 = _reference(x2, w_m2, b_m2, m_m2, w_s2, b_s2, m_s2,
                      temperature=temperature, signal_modules=modules)
    assert out2.shape == (B2, L2, Cout2)
    assert jnp.allclose(out2, ref2, atol=1e-3, rtol=1e-3), "run2 mismatch vs reference"

    # --- Run 3: bf16 MXU operands (f32 accumulation), looser tolerance ------
    out3 = jax.block_until_ready(signal_processing_layer(
        x, w_m, b_m, m_m, w_s, b_s, m_s,
        temperature=temperature, signal_modules=modules,
        matmul_dtype=jnp.bfloat16))
    assert out3.shape == (B, L, Cout)
    assert jnp.allclose(out3, ref, atol=1e-1, rtol=1e-1), "bf16 run mismatch vs reference"

    print("KERNEL_OK")
</pallas_src>

<mosaic_0001>
module attributes {stable_mosaic.version = 11 : i64} {
  func.func @_signal_layer_kernel(%arg0: i32, %arg1: memref<1x8x128xf32, #tpu.memory_space<vmem>>, %arg2: memref<32x8xf32, #tpu.memory_space<vmem>>, %arg3: memref<32x1xf32, #tpu.memory_space<vmem>>, %arg4: memref<16x1xi32, #tpu.memory_space<vmem>>, %arg5: memref<1x16x128xf32, #tpu.memory_space<vmem>>) attributes {dimension_semantics = [#tpu.dimension_semantics<parallel>], iteration_bounds = array<i64: 4>, scalar_prefetch = 0 : i64, scratch_operands = 0 : i64, tpu.core_type = #tpu.core_type<tc>, window_params = [{transform_indices = @transform_0, window_bounds = array<i64: 1, 8, 128>}, {pipeline_mode = #tpu.pipeline_mode<synchronous>, transform_indices = @transform_1, window_bounds = array<i64: 32, 8>}, {pipeline_mode = #tpu.pipeline_mode<synchronous>, transform_indices = @transform_2, window_bounds = array<i64: 32, 1>}, {pipeline_mode = #tpu.pipeline_mode<synchronous>, transform_indices = @transform_3, window_bounds = array<i64: 16, 1>}, {transform_indices = @transform_4, window_bounds = array<i64: 1, 16, 128>}]} {
    %c0 = arith.constant 0 : index
    %c0_0 = arith.constant 0 : index
    %c0_1 = arith.constant 0 : index
    %0 = vector.load %arg1[%c0, %c0_0, %c0_1] : memref<1x8x128xf32, #tpu.memory_space<vmem>>, vector<1x8x128xf32>
    %cst = arith.constant dense<0.000000e+00> : vector<1x8xf32>
    %1 = vector.multi_reduction <add>, %0, %cst [2] : vector<1x8x128xf32> to vector<1x8xf32>
    %2 = vector.shape_cast %1 : vector<1x8xf32> to vector<1x8x1xf32>
    %cst_2 = arith.constant 7.812500e-03 : f32
    %3 = vector.broadcast %cst_2 : f32 to vector<1x8x1xf32>
    %4 = arith.mulf %2, %3 : vector<1x8x1xf32>
    %5 = vector.broadcast %4 : vector<1x8x1xf32> to vector<1x8x128xf32>
    %6 = arith.subf %0, %5 : vector<1x8x128xf32>
    %7 = arith.mulf %6, %6 : vector<1x8x128xf32>
    %cst_3 = arith.constant dense<0.000000e+00> : vector<1x8xf32>
    %8 = vector.multi_reduction <add>, %7, %cst_3 [2] : vector<1x8x128xf32> to vector<1x8xf32>
    %9 = vector.shape_cast %8 : vector<1x8xf32> to vector<1x8x1xf32>
    %cst_4 = arith.constant 7.812500e-03 : f32
    %10 = vector.broadcast %cst_4 : f32 to vector<1x8x1xf32>
    %11 = arith.mulf %9, %10 : vector<1x8x1xf32>
    %cst_5 = arith.constant 9.99999974E-6 : f32
    %12 = vector.broadcast %cst_5 : f32 to vector<1x8x1xf32>
    %13 = arith.addf %11, %12 : vector<1x8x1xf32>
    %14 = math.rsqrt %13 : vector<1x8x1xf32>
    %15 = vector.broadcast %14 : vector<1x8x1xf32> to vector<1x8x128xf32>
    %16 = arith.mulf %6, %15 : vector<1x8x128xf32>
    %c0_6 = arith.constant 0 : index
    %c0_7 = arith.constant 0 : index
    %17 = vector.load %arg2[%c0_6, %c0_7] : memref<32x8xf32, #tpu.memory_space<vmem>>, vector<32x8xf32>
    %18 = vector.shape_cast %17 : vector<32x8xf32> to vector<1x32x8xf32>
    %cst_8 = arith.constant dense<0.000000e+00> : vector<1x32x128xf32>
    %19 = tpu.matmul %18, %16, %cst_8 {dimension_numbers = #tpu.dot_dimension_numbers<[2], [1], [1], [2], [0, 0, 0, 1, 1, 2], [0], [0]>} : vector<1x32x8xf32>, vector<1x8x128xf32>, vector<1x32x128xf32> -> vector<1x32x128xf32>
    %c0_9 = arith.constant 0 : index
    %c0_10 = arith.constant 0 : index
    %20 = vector.load %arg3[%c0_9, %c0_10] : memref<32x1xf32, #tpu.memory_space<vmem>>, vector<32x1xf32>
    %21 = vector.shape_cast %20 : vector<32x1xf32> to vector<1x32x1xf32>
    %22 = vector.broadcast %21 : vector<1x32x1xf32> to vector<1x32x128xf32>
    %23 = arith.addf %19, %22 : vector<1x32x128xf32>
    %24 = vector.extract_strided_slice %23 {offsets = [0, 0, 0], sizes = [1, 16, 128], strides = [1, 1, 1]} : vector<1x32x128xf32> to vector<1x16x128xf32>
    %25 = vector.extract_strided_slice %23 {offsets = [0, 16, 0], sizes = [1, 16, 128], strides = [1, 1, 1]} : vector<1x32x128xf32> to vector<1x16x128xf32>
    %26 = vector.extract_strided_slice %24 {offsets = [0, 0, 0], sizes = [1, 8, 128], strides = [1, 1, 1]} : vector<1x16x128xf32> to vector<1x8x128xf32>
    %27 = math.absf %26 : vector<1x8x128xf32>
    %28 = vector.extract_strided_slice %25 {offsets = [0, 0, 0], sizes = [1, 8, 128], strides = [1, 1, 1]} : vector<1x16x128xf32> to vector<1x8x128xf32>
    %29 = arith.addf %27, %28 : vector<1x8x128xf32>
    %c0_11 = arith.constant 0 : index
    %c0_12 = arith.constant 0 : index
    %c0_13 = arith.constant 0 : index
    %30 = vector.load %arg5[%c0_11, %c0_12, %c0_13] : memref<1x16x128xf32, #tpu.memory_space<vmem>>, vector<1x8x128xf32>
    tpu.vector_store %arg5[%c0_11, %c0_12, %c0_13], %29 {strides = array<i32>} : memref<1x16x128xf32, #tpu.memory_space<vmem>>, vector<1x8x128xf32>,
    %31 = vector.extract_strided_slice %24 {offsets = [0, 8, 0], sizes = [1, 8, 128], strides = [1, 1, 1]} : vector<1x16x128xf32> to vector<1x8x128xf32>
    %32 = arith.mulf %31, %31 : vector<1x8x128xf32>
    %33 = vector.extract_strided_slice %25 {offsets = [0, 8, 0], sizes = [1, 8, 128], strides = [1, 1, 1]} : vector<1x16x128xf32> to vector<1x8x128xf32>
    %34 = arith.addf %32, %33 : vector<1x8x128xf32>
    %c0_14 = arith.constant 0 : index
    %c8 = arith.constant 8 : index
    %c0_15 = arith.constant 0 : index
    %35 = vector.load %arg5[%c0_14, %c8, %c0_15] : memref<1x16x128xf32, #tpu.memory_space<vmem>>, vector<1x8x128xf32>
    tpu.vector_store %arg5[%c0_14, %c8, %c0_15], %34 {strides = array<i32>} : memref<1x16x128xf32, #tpu.memory_space<vmem>>, vector<1x8x128xf32>,
    return
  }
  func.func @transform_0(%arg0: i32) -> (i32, i32, i32) {
    %c0_i32 = arith.constant 0 : i32
    %c0_i32_0 = arith.constant 0 : i32
    %c0_i32_1 = arith.constant 0 : i32
    return %arg0, %c0_i32, %c0_i32_0 : i32, i32, i32
  }
  func.func @transform_1(%arg0: i32) -> (i32, i32) {
    %c0_i32 = arith.constant 0 : i32
    %c0_i32_0 = arith.constant 0 : i32
    %c0_i32_1 = arith.constant 0 : i32
    return %c0_i32, %c0_i32_0 : i32, i32
  }
  func.func @transform_2(%arg0: i32) -> (i32, i32) {
    %c0_i32 = arith.constant 0 : i32
    %c0_i32_0 = arith.constant 0 : i32
    %c0_i32_1 = arith.constant 0 : i32
    return %c0_i32, %c0_i32_0 : i32, i32
  }
  func.func @transform_3(%arg0: i32) -> (i32, i32) {
    %c0_i32 = arith.constant 0 : i32
    %c0_i32_0 = arith.constant 0 : i32
    %c0_i32_1 = arith.constant 0 : i32
    return %c0_i32, %c0_i32_0 : i32, i32
  }
  func.func @transform_4(%arg0: i32) -> (i32, i32, i32) {
    %c0_i32 = arith.constant 0 : i32
    %c0_i32_0 = arith.constant 0 : i32
    %c0_i32_1 = arith.constant 0 : i32
    return %arg0, %c0_i32, %c0_i32_0 : i32, i32, i32
  }
}

</mosaic_0001>

<bundles_post_ra>
// kernel: tpu_custom_call.1
= control target key start
LH: loop header
LB: loop body
LE: loop exit
PB: predicated region body
PF: predicated region fallthrough
CT: control target
= control target key end

     0   :  { %9 = vsyncpa [#allocation3], 0  ;;  %s635_s0 = inlined_call_operand.vmem [shape: f32[4,8,128], index: 0, kind: input, shape index: {}]   ;;  %s636_s1 = inlined_call_operand.vmem [shape: f32[32,8], index: 1, kind: input, shape index: {}]   ;;  %s637_s2 = inlined_call_operand.vmem [shape: f32[32,1], index: 2, kind: input, shape index: {}]   ;;  %s638_s3 = inlined_call_operand.vmem [shape: s32[16,1], index: 3, kind: input, shape index: {}]   ;;  %s639_s4 = inlined_call_operand.hbm [shape: f32[4,16,128], index: 4, kind: output, shape index: {}]  }
   0x1   :  { %11 = vsyncpa [#allocation3 + $0x1], 0  ;;  %s526_s15 = smov 0   ;;  %s528_s16 = smov 0  }
   0x2   :  { %s530_s17 = smov 0   ;;  %s532_s18 = smov 0  }
   0x3 LB: > { %s547_s3 = sadd.s32 4294967295, %s496_s18   ;;  %s368_s19 = sadd.s32 4294967294, %s496_s18   ;;  %s496_s18 = sphi %s532_s18, %s645_s18   ;;  %s492_s17 = sphi %s530_s17, %s644_s17   ;;  %s488_s16 = sphi %s528_s16, %s643_s16   ;;  %s484_s15 = sphi %s526_s15, %s642_s15  }
   0x4   : > { %s551_s20 = sadd.s32 1, %s496_s18   ;;  %s113_s21 = sadd.s32 1, %s492_s17 }
   0x5   : > { %s110_s22 = ssub.s32 %s496_s18, %s551_s20  ;;  %p123_p0 = scmp.ne.s32.totalorder %s492_s17, %s488_s16 }
   0x6   : > { %p111_p1 = scmp.eq.s32.totalorder %s110_s22, 0  ;;  %p124_p2 = scmp.eq.s32.totalorder %s547_s3, 3 }
   0x7   : > { %p129_p3 = scmp.ne.s32.totalorder %s488_s16, %s484_s15  ;;  %p130_p4 = scmp.eq.s32.totalorder %s368_s19, 3 }
   0x8   : > { %s562_s23 = scalar_select %p111_p1, %s492_s17, %s113_s21  }
   0x9   : > { %p564_p5 = por %p124_p2, %p123_p0  ;;  %p568_p6 = por %p130_p4, %p129_p3 }
   0xa   : > { %p371_p7 = scmp.ge.s32.totalorder %s496_s18, 1  ;;  %p164_p8 = scmp.lt.s32.totalorder %s496_s18, 5 }
   0xc   : > { %p165_p9 = pnand %p371_p7, %p164_p8 }
   0xd   : > { %p189_p10 = scmp.lt.s32.totalorder (!%p165_p9), %s547_s3, 3  ;;  %s186_s29 = sand.u32 (!%p165_p9), 1, %s488_s16  }
   0xe   : > { %168 = sbr.rel (%p165_p9) target bundleno = 430 (0x1ae), region = 36  ;;  %s383_s5 = sshll.u32 (!%p165_p9), %s547_s3, 4 }
   0xf   : > { %s302_s8 = scalar_lea.hbm (!%p165_p9), %s639_s4, %s383_s5  ;;  %s454_s21 = scalar_lea.hbm (!%p165_p9), %s639_s4, 64 }
  0x10   : > { %s305_s11 = sshll.u32 (!%p165_p9), %s302_s8, 4  ;;  %s306_s11 = int_to_ptr.hbm [resolvable:$true] %s305_s11 }
  0x11   : > { %s448_s12 = sshra.s32 (!%p165_p9), %s306_s11, 4  ;;  %s449_s12 = int_to_ptr.hbm [resolvable:$true] %s448_s12 }
  0x12   : > { %s450_s13 = scalar_lea.hbm (!%p165_p9), %s449_s12, 16  ;;  %p455_p0 = scmp.lt.s32.totalorder (!%p165_p9), %s449_s12, %s639_s4 }
  0x13   : > { %s190_s26 = scalar_select %p189_p10, %s547_s3, 3  ;;  %v218_v5 = vld [vmem:[%s637_s2] sm:$0xff]  ;;  %v498_v6 = vmov 0   ;;  %v220_v7 = vld [vmem:[%s637_s2 + $0x10] sm:$0xff]  ;;  %v219_v8 = vld [vmem:[%s637_s2 + $0x8] sm:$0xff]  ;;  %vm242_vm3 = vcmask 64512  }
  0x14   : > { %429 = vset.pattern.permute.xlu1 %v498_v6  ;;  %430 = vset.pattern.permute.xlu2 %v498_v6  ;;  %v221_v11 = vld [vmem:[%s637_s2 + $0x18] sm:$0xff]  ;;  %v214_v21 = vld [vmem:[%s636_s1] sm:$0xff]  ;;  %v215_v22 = vld [vmem:[%s636_s1 + $0x8] sm:$0xff]  ;;  %s291_s3 = scalar_lea.sflag [#allocation3], %s186_s29  ;;  %p451_p11 = scmp.ne.s32.totalorder %s449_s12, %s450_s13 }
  0x15   : > { %s373_s27 = sshll.u32 %s190_s26, 3  ;;  %224 = vperm.xlu1 %429, %v218_v5   ;;  %431 = vset.pattern.permute.xlu0 %v498_v6  ;;  %v216_v23 = vld [vmem:[%s636_s1 + $0x10] sm:$0xff]  ;;  %v217_v24 = vld [vmem:[%s636_s1 + $0x18] sm:$0xff]  ;;  %p456_p1 = scmp.lt.s32.totalorder %s454_s21, %s450_s13 }
  0x16   : > { %s192_s30 = scalar_lea.vmem %s635_s0, %s373_s27  ;;  %234 = vperm.xlu2 %430, %v220_v7   ;;  %p452_p12 = pnand %p451_p11, %p564_p5 }
  0x17   : > { %v193_v0 = vld [vmem:[%s192_s30] sm:$0xff]  ;;  %s372_s30 = sshll.u32 %s186_s29, 4  ;;  %p457_p2 = por %p456_p1, %p455_p0 }
  0x18   : > { %194 = vadd.xlane.f32.xlu0 %v193_v0  ;;  %s188_s9 = scalar_lea.vmem [#allocation2], %s372_s30  ;;  %p453_p13 = pneg %p452_p12 }
  0x19   : > { %s303_s10 = sshll.u32 %s188_s9, 4  ;;  %s304_s10 = int_to_ptr.vmem [resolvable:$true] %s303_s10 }
  0x1a   : > { %p458_p3 = pnand %p457_p2, %p453_p13 }
  0x1d   : > { %229 = vperm.xlu1 %429, %v219_v8  }
  0x1e   : > { %239 = vperm.xlu2 %430, %v221_v11  }
  0x70   : > { %v235_v26 = vpop.permute.xlu2 %234 }
  0x78   : > { %v240_v32 = vpop.permute.xlu2 %239 }
  0x87   : > { %v225_v25 = vpop.permute.xlu1 %224 }
  0x8b   : > { %v195_v1 = vpop.xlane.xlu0 %194 }
  0x8c   : > { %v196_v2 = vmul.f32 0.0078125, %v195_v1 }
  0x8e   : > { %v197_v3 = vsub.f32 %v193_v0, %v196_v2 }
  0x8f   : > { %v230_v29 = vpop.permute.xlu1 %229 }
  0x90   : > { %v198_v4 = vmul.f32 %v197_v3, %v197_v3 }
  0x92   : > { %199 = vadd.xlane.f32.xlu0 %v198_v4 }
 0x105   : > { %v200_v9 = vpop.xlane.xlu0 %199 }
 0x106   : > { %v201_v10 = vmul.f32 0.0078125, %v200_v9 }
 0x108   : > { %v202_v12 = vadd.f32 1e-05, %v201_v10 }
 0x10a   : > { %432 = vrsqrt.f32 %v202_v12  ;;  %vm209_vm1 = vweird.f32 %v202_v12 }
 0x110   : > { %v433_v13 = vpop.eup %432 }
 0x111   : > { %v204_v14 = vmul.f32 %v433_v13, %v202_v12  ;;  %vm210_vm0 = vweird.f32 %v433_v13 }
 0x112   : > { %vm211_vm2 = vmor %vm209_vm1, %vm210_vm0 }
 0x113   : > { %v205_v15 = vmul.f32 %v433_v13, %v204_v14 }
 0x115   : > { %v206_v16 = vmul.f32 0.5, %v205_v15 }
 0x117   : > { %v207_v17 = vsub.f32 1.5, %v206_v16 }
 0x119   : > { %v208_v18 = vmul.f32 %v433_v13, %v207_v17 }
 0x11b   : > { %v212_v19 = vsel %vm211_vm2, %v433_v13, %v208_v18 }
 0x11c   : > { %v213_v20 = vmul.f32 %v212_v19, %v197_v3 }
 0x11e   : > { %270 = vmatpush.msra.mxu0 %v213_v20  ;;  %384 = vmatpush.msra.mxu1 %v213_v20 }
 0x11f   : > { %385 = vmatpush.msra.mxu2 %v213_v20  ;;  %386 = vmatpush.msra.mxu3 %v213_v20 }
 0x120   : > { %374 = vmatmul.msk.f32.vlgmr.msra.gmra.mxu0 %vm242_vm3, %v214_v21  ;;  %375 = vmatmul.msk.f32.vlgmr.msra.gmra.mxu1 %vm242_vm3, %v215_v22 }
 0x121   : > { %376 = vmatmul.msk.f32.vlgmr.msra.gmra.mxu2 %vm242_vm3, %v216_v23  ;;  %377 = vmatmul.msk.f32.vlgmr.msra.gmra.mxu3 %vm242_vm3, %v217_v24 }
 0x19d   : > { %v272_v27 = vpop.f32.mrf.mxu0  ;;  %v275_v28 = vpop.f32.mrf.mxu1 }
 0x19e   : > { %v273_v30 = vadd.f32 %v272_v27, %v225_v25  ;;  %v276_v31 = vadd.f32 %v275_v28, %v230_v29 }
 0x1a0   : > { %v284_v35 = vand.u32 2147483647, %v273_v30  ;;  %v287_v36 = vmul.f32 %v276_v31, %v276_v31 }
 0x1a4   : > { %v278_v33 = vpop.f32.mrf.mxu2  ;;  %v281_v34 = vpop.f32.mrf.mxu3 }
 0x1a5   : > { %v279_v37 = vadd.f32 %v278_v33, %v235_v26  ;;  %v282_v38 = vadd.f32 %v281_v34, %v240_v32 }
 0x1a7   : > { %v285_v39 = vadd.f32 %v284_v35, %v279_v37  ;;  %v288_v40 = vadd.f32 %v287_v36, %v282_v38 }
 0x1a9   : > { %286 = vst [vmem:[%s188_s9] sm:$0xff] %v285_v39 }
 0x1aa   : > { %289 = vst [vmem:[%s188_s9 + $0x8] sm:$0xff] %v288_v40 }
 0x1ab   : > { %461 = shalt.err (!%p458_p3)
}
 0x1ac   : > { %s499_s27 = smov 128   ;;  %s500_s28 = smov 8  }
 0x1ad   : > { %387 = dma.vmem_to_hbm [thread:$0]  (%p564_p5), %s304_s10, 256, %s306_s11, %s291_s3, %s499_s27, %s499_s27, %s500_s28  }
 0x1ae PF: > { %p393_p4 = scmp.ge.s32.totalorder %s496_s18, 2  ;;  %s320_s29 = sand.u32 1, %s484_s15  }
 0x1af   : > { %s321_s30 = scalar_lea.sflag [#allocation3], %s320_s29 }
 0x1b0   : > { %p390_p7 = pnand %p393_p4, %p568_p6 }
 0x1b2   : > { %p391_p8 = pneg %p390_p7 }
 0x1b4   : > { %479 = dma.done.wait (%p391_p8), %s321_s30, 256  }
 0x1b5   : > { %481 = vsyncadd (%p391_p8), %s321_s30, 4294967040  ;;  %p14_p9 = scmp.ge.s32.totalorder %s551_s20, 6   ;;  %s642_s15 = smov %s488_s16 }
 0x1b6   : > { %s643_s16 = smov %s492_s17  ;;  %s644_s17 = smov %s562_s23 }
 0x1b7   : > { %s645_s18 = smov %s551_s20  ;;  %16 = sbr.rel (!%p14_p9) target bundleno = 3 (0x3), region = 71 }
 0x1bc   :  { %327 = vsyncpa [#allocation3], 1 }
 0x1bd   :  { %329 = vsyncpa [#allocation3 + $0x1], 1 }

</bundles_post_ra>
